<compile_context>
chip_gen: v5e
topology: v5e:2x2
jax: 0.10.0
libtpu: 0.0.40
codegen_flags: <defaults>
</compile_context>

<pallas_src>
import jax
import jax.numpy as jnp
from jax import lax
from jax.experimental import pallas as pl
from jax.experimental.pallas import tpu as pltpu

NEG_INF = -1e30  # finite "-inf": avoids inf-inf NaNs in the online softmax


# ----------------------------------------------------------------------------
# Stage 1: fused projection  H = X @ [W_l | W_g]
# ----------------------------------------------------------------------------
def proj_kernel(x_ref, w_ref, h_ref):
    h_ref[...] = jnp.dot(x_ref[...], w_ref[...],
                         preferred_element_type=jnp.float32)


# ----------------------------------------------------------------------------
# Stage 2: masked attention (online softmax) + aggregation + combine + ELU
# ----------------------------------------------------------------------------
def hgat_attn_kernel(h_dst_ref, h_src_ref, adj_l_ref, adj_g_ref,
                     asrc_ref, adst_ref, bias_ref, wc_ref, bc_ref,
                     out_ref,
                     adl_ref, adg_ref, ml_ref, ll_ref, mg_ref, lg_ref,
                     accl_ref, accg_ref):
    k = pl.program_id(1)
    hidp = accl_ref.shape[1]

    @pl.when(k == 0)
    def _init():
        # dst-side attention logits, once per dst tile: VPU multiply + lane
        # reduce (not a width-1 MXU matmul).  Uses the precomputed H tile.
        h_dst = h_dst_ref[...]
        adst = adst_ref[...]
        adl_ref[...] = jnp.sum(h_dst[:, :hidp] * adst[:, :hidp],
                               axis=-1, keepdims=True)                # [TM, 1]
        adg_ref[...] = jnp.sum(h_dst[:, hidp:] * adst[:, hidp:],
                               axis=-1, keepdims=True)
        ml_ref[...] = jnp.full_like(ml_ref, NEG_INF)
        mg_ref[...] = jnp.full_like(mg_ref, NEG_INF)
        ll_ref[...] = jnp.zeros_like(ll_ref)
        lg_ref[...] = jnp.zeros_like(lg_ref)
        accl_ref[...] = jnp.zeros_like(accl_ref)
        accg_ref[...] = jnp.zeros_like(accg_ref)

    h_src = h_src_ref[...]                                            # [TK, 2*HIDP]
    asrc = asrc_ref[...]
    # a_src produced directly as [1, TK] so the src dim stays in the lane dim.
    asl = lax.dot_general(asrc[:, :hidp], h_src[:, :hidp],
                          (((1,), (1,)), ((), ())),
                          preferred_element_type=jnp.float32)         # [1, TK]
    asg = lax.dot_general(asrc[:, hidp:], h_src[:, hidp:],
                          (((1,), (1,)), ((), ())),
                          preferred_element_type=jnp.float32)

    def branch_update(adj, a_dst, a_src, h_src_b, m_ref, l_ref, acc_ref):
        e = a_dst + a_src                                             # [TM, TK]
        e = jnp.where(e > 0, e, 0.2 * e)                              # LeakyReLU(0.2)
        e = jnp.where(adj > 0, e, NEG_INF)                            # single mask
        m_prev = m_ref[...]
        m_new = jnp.maximum(m_prev, jnp.max(e, axis=-1, keepdims=True))
        corr = jnp.exp(m_prev - m_new)
        p = jnp.exp(e - m_new)              # masked entries underflow to exact 0
        l_ref[...] = corr * l_ref[...] + jnp.sum(p, axis=-1, keepdims=True)
        acc_ref[...] = corr * acc_ref[...] + jnp.dot(
            p, h_src_b, preferred_element_type=jnp.float32)
        m_ref[...] = m_new

    branch_update(adj_l_ref[...], adl_ref[...], asl, h_src[:, :hidp],
                  ml_ref, ll_ref, accl_ref)
    branch_update(adj_g_ref[...], adg_ref[...], asg, h_src[:, hidp:],
                  mg_ref, lg_ref, accg_ref)

    @pl.when(k == pl.num_programs(1) - 1)
    def _finalize():
        # One EUP reciprocal per dst row instead of an [N, N] divide.
        inv_l = pl.reciprocal(ll_ref[...], approx=True)
        inv_g = pl.reciprocal(lg_ref[...], approx=True)
        bias = bias_ref[...]
        out_l = accl_ref[...] * inv_l + bias[:, :hidp]                # [TM, HIDP]
        out_g = accg_ref[...] * inv_g + bias[:, hidp:]
        wc = wc_ref[...]
        z = (jnp.dot(out_l, wc[:hidp, :], preferred_element_type=jnp.float32)
             + jnp.dot(out_g, wc[hidp:, :], preferred_element_type=jnp.float32)
             + bc_ref[...])
        out_ref[...] = jnp.where(z > 0, z, jnp.exp(z) - 1.0)          # ELU


def _round_up(v, m):
    return (v + m - 1) // m * m


def hierarchical_gat(x, adj_local, adj_global, params, out_channels, *,
                     tile_n=128):
    """Fused HierarchicalGATLayer forward pass via tiled Pallas TPU kernels."""
    n, in_c = x.shape
    hid = params["w_l"].shape[1]
    f32 = jnp.float32

    # Pad feature dims to the 128-lane width; node dim to the tile size.
    inp = _round_up(in_c, 128)
    hidp = _round_up(hid, 128)
    outp = _round_up(out_channels, 128)
    if n <= tile_n:
        np_ = _round_up(n, 8)
        t = np_                      # single full-extent tile
    else:
        t = _round_up(tile_n, 128)   # lane dim of the adjacency tiles
        np_ = _round_up(n, t)

    xp = jnp.zeros((np_, inp), f32).at[:n, :in_c].set(x.astype(f32))
    adj_l = jnp.zeros((np_, np_), jnp.int8).at[:n, :n].set(
        adj_local.astype(jnp.int8))
    adj_g = jnp.zeros((np_, np_), jnp.int8).at[:n, :n].set(
        adj_global.astype(jnp.int8))

    # Fused + padded parameters: [W_l | W_g], [att_l | att_g], stacked combine.
    w = (jnp.zeros((inp, 2 * hidp), f32)
         .at[:in_c, :hid].set(params["w_l"])
         .at[:in_c, hidp:hidp + hid].set(params["w_g"]))
    att_src = (jnp.zeros((1, 2 * hidp), f32)
               .at[:, :hid].set(params["att_src_l"])
               .at[:, hidp:hidp + hid].set(params["att_src_g"]))
    att_dst = (jnp.zeros((1, 2 * hidp), f32)
               .at[:, :hid].set(params["att_dst_l"])
               .at[:, hidp:hidp + hid].set(params["att_dst_g"]))
    bias = (jnp.zeros((1, 2 * hidp), f32)
            .at[:, :hid].set(params["bias_l"])
            .at[:, hidp:hidp + hid].set(params["bias_g"]))
    wc = (jnp.zeros((2 * hidp, outp), f32)
          .at[:hid, :out_channels].set(params["w_c_local"])
          .at[hidp:hidp + hid, :out_channels].set(params["w_c_global"]))
    bc = jnp.zeros((1, outp), f32).at[:, :out_channels].set(params["b_c"])

    n_tiles = np_ // t

    # ---- Stage 1: projection kernel (one pass over the node tiles) ----------
    h = pl.pallas_call(
        proj_kernel,
        out_shape=jax.ShapeDtypeStruct((np_, 2 * hidp), f32),
        grid_spec=pltpu.PrefetchScalarGridSpec(
            num_scalar_prefetch=0,
            grid=(n_tiles,),
            in_specs=[pl.BlockSpec((t, inp), lambda i: (i, 0)),
                      pl.BlockSpec((inp, 2 * hidp), lambda i: (0, 0))],
            out_specs=pl.BlockSpec((t, 2 * hidp), lambda i: (i, 0)),
        ),
        compiler_params=pltpu.CompilerParams(
            dimension_semantics=("parallel",),
            vmem_limit_bytes=32 * 1024 * 1024,
        ),
    )(xp, w)

    # ---- Stage 2: attention / aggregation / combine kernel ------------------
    grid = (n_tiles, n_tiles)

    in_specs = [
        pl.BlockSpec((t, 2 * hidp), lambda i, k: (i, 0)),  # H rows of dst tile
        pl.BlockSpec((t, 2 * hidp), lambda i, k: (k, 0)),  # H rows of src tile
        pl.BlockSpec((t, t), lambda i, k: (i, k)),         # adj_local (int8)
        pl.BlockSpec((t, t), lambda i, k: (i, k)),         # adj_global (int8)
        pl.BlockSpec((1, 2 * hidp), lambda i, k: (0, 0)),  # att_src
        pl.BlockSpec((1, 2 * hidp), lambda i, k: (0, 0)),  # att_dst
        pl.BlockSpec((1, 2 * hidp), lambda i, k: (0, 0)),  # bias
        pl.BlockSpec((2 * hidp, outp), lambda i, k: (0, 0)),
        pl.BlockSpec((1, outp), lambda i, k: (0, 0)),
    ]
    out_spec = pl.BlockSpec((t, outp), lambda i, k: (i, 0))

    out_padded = pl.pallas_call(
        hgat_attn_kernel,
        out_shape=jax.ShapeDtypeStruct((np_, outp), f32),
        grid_spec=pltpu.PrefetchScalarGridSpec(
            num_scalar_prefetch=0,
            grid=grid,
            in_specs=in_specs,
            out_specs=out_spec,
            scratch_shapes=[
                pltpu.VMEM((t, 1), f32),      # a_dst (local)
                pltpu.VMEM((t, 1), f32),      # a_dst (global)
                pltpu.VMEM((t, 1), f32),      # m (local)
                pltpu.VMEM((t, 1), f32),      # l (local)
                pltpu.VMEM((t, 1), f32),      # m (global)
                pltpu.VMEM((t, 1), f32),      # l (global)
                pltpu.VMEM((t, hidp), f32),   # acc (local)
                pltpu.VMEM((t, hidp), f32),   # acc (global)
            ],
        ),
        compiler_params=pltpu.CompilerParams(
            # dst-row axis shards across TensorCores (v7x megacore); the src
            # (reduction) axis stays last and "arbitrary".
            dimension_semantics=("parallel", "arbitrary"),
            vmem_limit_bytes=32 * 1024 * 1024,
        ),
    )(h, h, adj_l, adj_g, att_src, att_dst, bias, wc, bc)

    return out_padded[:n, :out_channels]


def edge_index_to_adj(edge_index, n):
    """Dense int8 adj[dst, src] = 1 for each edge, plus self loops."""
    src = edge_index[0]
    dst = edge_index[1]
    adj = jnp.zeros((n, n), jnp.int8).at[dst, src].set(1)
    adj = jnp.maximum(adj, jnp.eye(n, dtype=jnp.int8))
    return adj


def init_params(key, in_channels, hidden_channels, out_channels):
    ks = jax.random.split(key, 10)
    s_in = 1.0 / jnp.sqrt(in_channels)
    s_h = 1.0 / jnp.sqrt(hidden_channels)
    s_c = 1.0 / jnp.sqrt(2 * hidden_channels)
    return {
        # local GATConv (heads=1)
        "w_l": jax.random.normal(ks[0], (in_channels, hidden_channels), jnp.float32) * s_in,
        "att_src_l": jax.random.normal(ks[1], (1, hidden_channels), jnp.float32) * s_h,
        "att_dst_l": jax.random.normal(ks[2], (1, hidden_channels), jnp.float32) * s_h,
        "bias_l": jnp.zeros((1, hidden_channels), jnp.float32),
        # global GATConv (heads=1)
        "w_g": jax.random.normal(ks[3], (in_channels, hidden_channels), jnp.float32) * s_in,
        "att_src_g": jax.random.normal(ks[4], (1, hidden_channels), jnp.float32) * s_h,
        "att_dst_g": jax.random.normal(ks[5], (1, hidden_channels), jnp.float32) * s_h,
        "bias_g": jnp.zeros((1, hidden_channels), jnp.float32),
        # combine Linear(2*hidden -> out), split into the two halves of its weight
        "w_c_local": jax.random.normal(ks[6], (hidden_channels, out_channels), jnp.float32) * s_c,
        "w_c_global": jax.random.normal(ks[7], (hidden_channels, out_channels), jnp.float32) * s_c,
        "b_c": jax.random.normal(ks[8], (1, out_channels), jnp.float32) * s_c,
    }


def reference(x, adj_l, adj_g, p):
    """Pure-JAX reference with identical math (for correctness check)."""
    def branch(w, a_s, a_d, b, adj):
        h = x @ w
        e = (h @ a_d.T) + (h @ a_s.T).T
        e = jnp.where(e > 0, e, 0.2 * e)
        e = jnp.where(adj > 0, e, NEG_INF)
        e = e - jnp.max(e, axis=-1, keepdims=True)
        pr = jnp.exp(e)                       # masked entries underflow to 0
        alpha = pr / jnp.sum(pr, axis=-1, keepdims=True)
        return alpha @ h + b
    lo = branch(p["w_l"], p["att_src_l"], p["att_dst_l"], p["bias_l"], adj_l)
    gl = branch(p["w_g"], p["att_src_g"], p["att_dst_g"], p["bias_g"], adj_g)
    z = lo @ p["w_c_local"] + gl @ p["w_c_global"] + p["b_c"]
    return jnp.where(z > 0, z, jnp.exp(z) - 1.0)


if __name__ == "__main__":
    key = jax.random.PRNGKey(0)

    def run_case(n, in_c, hid, out_c, m_local, m_global, tile_n, case_key):
        k_x, k_el, k_eg, k_p = jax.random.split(case_key, 4)
        x = jax.random.normal(k_x, (n, in_c), jnp.float32)
        ei_l = jax.random.randint(k_el, (2, m_local), 0, n, jnp.int32)
        ei_g = jax.random.randint(k_eg, (2, m_global), 0, n, jnp.int32)
        adj_l = edge_index_to_adj(ei_l, n)
        adj_g = edge_index_to_adj(ei_g, n)
        params = init_params(k_p, in_c, hid, out_c)

        out = hierarchical_gat(x, adj_l, adj_g, params, out_c, tile_n=tile_n)
        out = jax.block_until_ready(out)

        ref = reference(x, adj_l, adj_g, params)
        assert out.shape == (n, out_c)
        # tolerance covers the approximate EUP reciprocal + online softmax.
        err = float(jnp.max(jnp.abs(out - ref)))
        assert jnp.allclose(out, ref, atol=1e-2, rtol=1e-2), err
        return out

    k1, k2 = jax.random.split(key, 2)
    # small case matching the module's toy shapes (single-tile path)
    run_case(n=8, in_c=16, hid=32, out_c=16, m_local=20, m_global=12,
             tile_n=128, case_key=k1)
    # multi-tile case exercising the online softmax across src tiles and the
    # parallel dst-tile grid axis (N padded to 256, grid (2, 2))
    run_case(n=200, in_c=16, hid=32, out_c=16, m_local=600, m_global=300,
             tile_n=128, case_key=k2)

    print("KERNEL_OK")
</pallas_src>

<mosaic_0001>
module attributes {stable_mosaic.version = 11 : i64} {
  func.func @proj_kernel(%arg0: i32, %arg1: memref<8x128xf32, #tpu.memory_space<vmem>>, %arg2: memref<128x256xf32, #tpu.memory_space<vmem>>, %arg3: memref<8x256xf32, #tpu.memory_space<vmem>>) attributes {dimension_semantics = [#tpu.dimension_semantics<parallel>], iteration_bounds = array<i64: 1>, scalar_prefetch = 0 : i64, scratch_operands = 0 : i64, tpu.core_type = #tpu.core_type<tc>, window_params = [{transform_indices = @transform_0, window_bounds = array<i64: 8, 128>}, {pipeline_mode = #tpu.pipeline_mode<synchronous>, transform_indices = @transform_1, window_bounds = array<i64: 128, 256>}, {transform_indices = @transform_2, window_bounds = array<i64: 8, 256>}]} {
    %c0 = arith.constant 0 : index
    %c0_0 = arith.constant 0 : index
    %0 = vector.load %arg1[%c0, %c0_0] : memref<8x128xf32, #tpu.memory_space<vmem>>, vector<8x128xf32>
    %c0_1 = arith.constant 0 : index
    %c0_2 = arith.constant 0 : index
    %1 = vector.load %arg2[%c0_1, %c0_2] : memref<128x256xf32, #tpu.memory_space<vmem>>, vector<128x256xf32>
    %cst = arith.constant dense<0.000000e+00> : vector<8x256xf32>
    %2 = tpu.matmul %0, %1, %cst {dimension_numbers = #tpu.dot_dimension_numbers<[1], [0], [0], [1], [0, 0, 1, 1], [], []>} : vector<8x128xf32>, vector<128x256xf32>, vector<8x256xf32> -> vector<8x256xf32>
    %c0_3 = arith.constant 0 : index
    %c0_4 = arith.constant 0 : index
    %3 = vector.load %arg3[%c0_3, %c0_4] : memref<8x256xf32, #tpu.memory_space<vmem>>, vector<8x256xf32>
    tpu.vector_store %arg3[%c0_3, %c0_4], %2 {strides = array<i32>} : memref<8x256xf32, #tpu.memory_space<vmem>>, vector<8x256xf32>,
    return
  }
  func.func @transform_0(%arg0: i32) -> (i32, i32) {
    %c0_i32 = arith.constant 0 : i32
    %c0_i32_0 = arith.constant 0 : i32
    return %arg0, %c0_i32 : i32, i32
  }
  func.func @transform_1(%arg0: i32) -> (i32, i32) {
    %c0_i32 = arith.constant 0 : i32
    %c0_i32_0 = arith.constant 0 : i32
    %c0_i32_1 = arith.constant 0 : i32
    return %c0_i32, %c0_i32_0 : i32, i32
  }
  func.func @transform_2(%arg0: i32) -> (i32, i32) {
    %c0_i32 = arith.constant 0 : i32
    %c0_i32_0 = arith.constant 0 : i32
    return %arg0, %c0_i32 : i32, i32
  }
}

</mosaic_0001>

<bundles_post_ra>
// kernel: tpu_custom_call.1
= control target key start
LH: loop header
LB: loop body
LE: loop exit
PB: predicated region body
PF: predicated region fallthrough
CT: control target
= control target key end

     0   :  { %7 = vsyncpa [#allocation3], 0  ;;  %s247_s0 = inlined_call_operand.hbm [shape: f32[8,128], index: 0, kind: input, shape index: {}]   ;;  %s248_s1 = inlined_call_operand.hbm [shape: f32[128,256], index: 1, kind: input, shape index: {}]   ;;  %s249_s2 = inlined_call_operand.hbm [shape: f32[8,256], index: 2, kind: output, shape index: {}]  }
   0x1   :  { %8 = vsyncpa [#allocation6], 0 }
   0x2   :  { %9 = vsyncpa [#allocation4], 0  ;;  %s15_s11 = sshll.u32 %s247_s0, 4  ;;  %s218_s12 = smov [#allocation2]   ;;  %s16_s11 = int_to_ptr.hbm [resolvable:$true] %s15_s11 }
   0x3   :  { %s17_s13 = sshll.u32 %s218_s12, 4  ;;  %s25_s16 = sshll.u32 %s248_s1, 4  ;;  %s18_s13 = int_to_ptr.vmem [resolvable:$true] %s17_s13  ;;  %s26_s16 = int_to_ptr.hbm [resolvable:$true] %s25_s16 }
   0x4   :  { %20 = dma.hbm_to_vmem [thread:$0]  %s16_s11, 128, %s18_s13, [#allocation3]  }
   0x5   :  { %s219_s17 = smov [#allocation5]   ;;  %s220_s19 = smov 256  }
   0x6   :  { %s27_s18 = sshll.u32 %s219_s17, 4  ;;  %s221_s20 = smov 16   ;;  %s28_s18 = int_to_ptr.vmem [resolvable:$true] %s27_s18 }
   0x7   :  { %33 = dma.hbm_to_vmem [thread:$0]  %s26_s16, 4096, %s28_s18, [#allocation6], %s220_s19, %s220_s19, %s221_s20  }
   0x8   :  { %212 = dma.done.wait [#allocation3], 128  }
   0x9   :  { %213 = vsyncadd [#allocation3], 4294967168 }
   0xa   :  { %214 = dma.done.wait [#allocation6], 4096  }
   0xb   :  { %215 = vsyncadd [#allocation6], 4294963200  ;;  %v73_v0 = vld [vmem:[#allocation5 + $0xf0] sm:$0xff]  ;;  %v74_v1 = vld [vmem:[#allocation5 + $0xf8] sm:$0xff]  ;;  %s222_s0 = smov [#allocation7]   ;;  %s124_s23 = sshll.u32 %s249_s2, 4  ;;  %s125_s23 = int_to_ptr.hbm [resolvable:$true] %s124_s23 }
   0xc   :  { %v71_v2 = vld [vmem:[#allocation5 + $0xe0] sm:$0xff]  ;;  %75 = vmatpush.msra.mxu0 %v73_v0  ;;  %95 = vmatpush.msra.mxu1 %v74_v1  ;;  %v72_v3 = vld [vmem:[#allocation5 + $0xe8] sm:$0xff]  ;;  %v69_v4 = vld [vmem:[#allocation5 + $0xd0] sm:$0xff]  ;;  %s122_s1 = sshll.u32 %s222_s0, 4  ;;  %s123_s1 = int_to_ptr.vmem [resolvable:$true] %s122_s1 }
   0xd   :  { %v70_v5 = vld [vmem:[#allocation5 + $0xd8] sm:$0xff]  ;;  %v67_v6 = vld [vmem:[#allocation5 + $0xc0] sm:$0xff]  ;;  %v68_v7 = vld [vmem:[#allocation5 + $0xc8] sm:$0xff] }
   0xe   :  { %76 = vmatpush.msra.mxu0 %v71_v2  ;;  %96 = vmatpush.msra.mxu1 %v72_v3  ;;  %v65_v8 = vld [vmem:[#allocation5 + $0xb0] sm:$0xff]  ;;  %v66_v9 = vld [vmem:[#allocation5 + $0xb8] sm:$0xff]  ;;  %v63_v10 = vld [vmem:[#allocation5 + $0xa0] sm:$0xff] }
   0xf   :  { %v64_v11 = vld [vmem:[#allocation5 + $0xa8] sm:$0xff]  ;;  %v61_v12 = vld [vmem:[#allocation5 + $0x90] sm:$0xff]  ;;  %v62_v13 = vld [vmem:[#allocation5 + $0x98] sm:$0xff] }
  0x10   :  { %77 = vmatpush.msra.mxu0 %v69_v4  ;;  %97 = vmatpush.msra.mxu1 %v70_v5  ;;  %v59_v14 = vld [vmem:[#allocation5 + $0x80] sm:$0xff]  ;;  %v60_v15 = vld [vmem:[#allocation5 + $0x88] sm:$0xff]  ;;  %v57_v16 = vld [vmem:[#allocation5 + $0x70] sm:$0xff] }
  0x11   :  { %v58_v17 = vld [vmem:[#allocation5 + $0x78] sm:$0xff]  ;;  %v55_v18 = vld [vmem:[#allocation5 + $0x60] sm:$0xff]  ;;  %v56_v19 = vld [vmem:[#allocation5 + $0x68] sm:$0xff] }
  0x12   :  { %78 = vmatpush.msra.mxu0 %v67_v6  ;;  %98 = vmatpush.msra.mxu1 %v68_v7  ;;  %v53_v20 = vld [vmem:[#allocation5 + $0x50] sm:$0xff]  ;;  %v54_v21 = vld [vmem:[#allocation5 + $0x58] sm:$0xff]  ;;  %v51_v22 = vld [vmem:[#allocation5 + $0x40] sm:$0xff] }
  0x13   :  { %v52_v23 = vld [vmem:[#allocation5 + $0x48] sm:$0xff]  ;;  %v49_v24 = vld [vmem:[#allocation5 + $0x30] sm:$0xff]  ;;  %v50_v25 = vld [vmem:[#allocation5 + $0x38] sm:$0xff] }
  0x14   :  { %79 = vmatpush.msra.mxu0 %v65_v8  ;;  %99 = vmatpush.msra.mxu1 %v66_v9  ;;  %v47_v26 = vld [vmem:[#allocation5 + $0x20] sm:$0xff]  ;;  %v48_v27 = vld [vmem:[#allocation5 + $0x28] sm:$0xff]  ;;  %v45_v28 = vld [vmem:[#allocation5 + $0x10] sm:$0xff] }
  0x15   :  { %v46_v29 = vld [vmem:[#allocation5 + $0x18] sm:$0xff]  ;;  %v43_v30 = vld [vmem:[#allocation5] sm:$0xff]  ;;  %v44_v31 = vld [vmem:[#allocation5 + $0x8] sm:$0xff] }
  0x16   :  { %80 = vmatpush.msra.mxu0 %v63_v10  ;;  %100 = vmatpush.msra.mxu1 %v64_v11  ;;  %v42_v32 = vld [vmem:[#allocation2] sm:$0xff] }
  0x18   :  { %81 = vmatpush.msra.mxu0 %v61_v12  ;;  %101 = vmatpush.msra.mxu1 %v62_v13 }
  0x1a   :  { %82 = vmatpush.msra.mxu0 %v59_v14  ;;  %102 = vmatpush.msra.mxu1 %v60_v15 }
  0x1c   :  { %83 = vmatpush.msra.mxu0 %v57_v16  ;;  %103 = vmatpush.msra.mxu1 %v58_v17 }
  0x1e   :  { %84 = vmatpush.msra.mxu0 %v55_v18  ;;  %104 = vmatpush.msra.mxu1 %v56_v19 }
  0x20   :  { %85 = vmatpush.msra.mxu0 %v53_v20  ;;  %105 = vmatpush.msra.mxu1 %v54_v21 }
  0x22   :  { %86 = vmatpush.msra.mxu0 %v51_v22  ;;  %106 = vmatpush.msra.mxu1 %v52_v23 }
  0x24   :  { %87 = vmatpush.msra.mxu0 %v49_v24  ;;  %107 = vmatpush.msra.mxu1 %v50_v25 }
  0x26   :  { %88 = vmatpush.msra.mxu0 %v47_v26  ;;  %108 = vmatpush.msra.mxu1 %v48_v27 }
  0x28   :  { %89 = vmatpush.msra.mxu0 %v45_v28  ;;  %109 = vmatpush.msra.mxu1 %v46_v29 }
  0x2a   :  { %90 = vmatpush.msra.mxu0 %v43_v30  ;;  %110 = vmatpush.msra.mxu1 %v44_v31 }
  0x2b   :  { %91 = vmatmul.f32.vlgmr.msra.gmra.mxu0 %v42_v32  ;;  %111 = vmatmul.f32.vlgmr.msra.gmra.mxu1 %v42_v32 }
  0xa8   :  { %v92_v33 = vpop.f32.mrf.mxu0  ;;  %v112_v34 = vpop.f32.mrf.mxu1 }
  0xa9   :  { %115 = vst [vmem:[#allocation7] sm:$0xff] %v92_v33 }
  0xaa   :  { %116 = vst [vmem:[#allocation7 + $0x8] sm:$0xff] %v112_v34 }
  0xab   :  { %127 = dma.vmem_to_hbm [thread:$0]  %s123_s1, 256, %s125_s23, [#allocation4]  }
  0xac   :  { %216 = dma.done.wait [#allocation4], 256  }
  0xad   :  { %217 = vsyncadd [#allocation4], 4294967040 }
  0xae   :  { %132 = vsyncpa [#allocation3], 1 }
  0xaf   :  { %133 = vsyncpa [#allocation6], 1 }
  0xb0   :  { %134 = vsyncpa [#allocation4], 1 }

</bundles_post_ra>
